<compile_context>
chip_gen: v5e
topology: v5e:2x2
jax: 0.10.0
libtpu: 0.0.40
codegen_flags: <defaults>
</compile_context>

<pallas_src>
import jax
import jax.numpy as jnp
from jax.experimental import pallas as pl
from jax.experimental.pallas import tpu as pltpu

# Hyper-parameters that in the original module come from `opt`.
EPSILON = 0.05          # opt.sk_epsilon
SINKHORN_ITERS = 3      # opt.sinkhorn_iterations
TEMPERATURE = 0.1       # opt.proto_temperature

_INV_TEMPERATURE = 1.0 / TEMPERATURE
_TAU_OVER_EPS = TEMPERATURE / EPSILON                    # == 2.0 for these opts
_REUSE_SOFTMAX_EXP = abs(_TAU_OVER_EPS - 2.0) < 1e-12    # enables the e^2 trick


def _proto_loss_kernel(emb_ref, protos_ref, loss_ref, scores_ref):
    k = pl.program_id(0)
    tk = protos_ref.shape[1]

    # ---- gridded phase: one K-tile of scores (MXU) ---------------------------
    emb = emb_ref[...]                       # (2B, D)  bf16 (or f32)
    ptile = protos_ref[...]                  # (D, tk)  bf16 (or f32), RAW centroids
    # fold the init-time prototype L2 norm into a per-column scale on the scores
    p32 = ptile.astype(jnp.float32)
    inv_norm = jax.lax.rsqrt(jnp.sum(p32 * p32, axis=0, keepdims=True) + 1e-12)  # (1, tk)
    raw = jnp.dot(emb, ptile, preferred_element_type=jnp.float32)                # (2B, tk)
    col0 = pl.multiple_of(k * tk, tk)
    scores_ref[:, pl.ds(col0, tk)] = raw * inv_norm

    # ---- final phase: runs once on the resident (2B, K) scores ---------------
    @pl.when(k == pl.num_programs(0) - 1)
    def _():
        twoB, K = scores_ref.shape
        B = twoB // 2
        s3 = scores_ref[...].reshape(2, B, K)         # s3[0]=img scores, s3[1]=txt

        # log-softmax over prototypes (axis=2), both streams at once
        z = s3 * _INV_TEMPERATURE                     # (2, B, K)
        r = jnp.max(z, axis=2, keepdims=True)         # (2, B, 1) row max
        e = jnp.exp(z - r)                            # the only full-size exp
        ls = (z - r) - jnp.log(jnp.sum(e, axis=2, keepdims=True))

        # Sinkhorn initial Q = exp(s/eps) up to a per-stream constant (cancels).
        m = jnp.max(r, axis=1, keepdims=True)         # (2, 1, 1) per-stream max
        if _REUSE_SOFTMAX_EXP:
            # exp(s/eps - 2m) = e^2 * exp(2*(r - m));  only a (2,B,1) extra exp
            q = (e * e) * jnp.exp(2.0 * (r - m))
        else:
            q = jnp.exp((z - m) * _TAU_OVER_EPS)      # fallback: second full exp
        # torch: Q/=sum(Q); loop{ /=sum over B; /=K; /=sum over K; /=B }; *=B
        # -> per-stream scalars cancel; keep only the alternating normalizations.
        for _ in range(SINKHORN_ITERS):
            q = q * (1.0 / jnp.sum(q, axis=1, keepdims=True))   # over batch
            q = q * (1.0 / jnp.sum(q, axis=2, keepdims=True))   # over prototypes
        # rows of q sum to 1 (== torch's Q.T after the trailing *B)

        # fused cross-entropy: img_loss + txt_loss
        combined = q[1] * ls[0] + q[0] * ls[1]        # (B, K)
        loss_ref[0, 0] = -(1.0 / B) * jnp.sum(combined)


def proto_contrastive_loss(img_embeddings, txt_embeddings, prototypes, *, k_tile=128):
    """img/txt: (B, D); prototypes: (K, D) raw centroids (normalized in-kernel).

    Inputs may be bf16 (preferred: single-pass MXU, half HBM traffic) or f32.
    """
    B, D = img_embeddings.shape
    K = prototypes.shape[0]
    k_tile = min(k_tile, K)
    assert K % k_tile == 0, "K must be a multiple of the prototype tile"

    # Stack the two streams in the wrapper (fuses with the producer; avoids an
    # in-kernel concat copy) and lay the bank out as (D, K) so the kernel matmul
    # has no transposed operand.  In the real module the bank is a constant, so
    # this transpose is one-time, not per-call.
    emb = jnp.concatenate([img_embeddings, txt_embeddings], axis=0)   # (2B, D)
    protos_t = prototypes.T                                           # (D, K)

    out = pl.pallas_call(
        _proto_loss_kernel,
        out_shape=jax.ShapeDtypeStruct((1, 1), jnp.float32),
        grid_spec=pltpu.PrefetchScalarGridSpec(
            num_scalar_prefetch=0,
            grid=(K // k_tile,),
            in_specs=[
                pl.BlockSpec((2 * B, D), lambda k: (0, 0)),           # resident
                pl.BlockSpec((D, k_tile), lambda k: (0, k)),          # streamed over K
            ],
            out_specs=pl.BlockSpec((1, 1), lambda k: (0, 0),
                                   memory_space=pltpu.MemorySpace.SMEM),
            scratch_shapes=[pltpu.VMEM((2 * B, K), jnp.float32)],     # persistent scores
        ),
        compiler_params=pltpu.CompilerParams(
            dimension_semantics=("arbitrary",),
            vmem_limit_bytes=32 * 1024 * 1024,
        ),
    )(emb, protos_t)
    return out[0, 0]


def _reference(img, txt, prototypes):
    """Pure-JAX f32 reference mirroring the PyTorch forward, for verification."""
    protos = prototypes / jnp.sqrt(
        jnp.sum(prototypes * prototypes, axis=1, keepdims=True) + 1e-12)
    img_out = img @ protos.T
    txt_out = txt @ protos.T

    def sinkhorn(out):
        Q = jnp.exp(out / EPSILON).T      # (K, B)
        K_, B_ = Q.shape
        Q = Q / jnp.sum(Q)
        for _ in range(SINKHORN_ITERS):
            Q = Q / jnp.sum(Q, axis=1, keepdims=True)
            Q = Q / K_
            Q = Q / jnp.sum(Q, axis=0, keepdims=True)
            Q = Q / B_
        Q = Q * B_
        return Q.T

    img_q = sinkhorn(img_out)
    txt_q = sinkhorn(txt_out)
    img_ls = jax.nn.log_softmax(img_out / TEMPERATURE, axis=1)
    txt_ls = jax.nn.log_softmax(txt_out / TEMPERATURE, axis=1)
    img_loss = jnp.mean(-jnp.sum(txt_q * img_ls, axis=1))
    txt_loss = jnp.mean(-jnp.sum(img_q * txt_ls, axis=1))
    return img_loss + txt_loss


if __name__ == "__main__":
    # small synthetic shapes (real banks: K=896/2560); K=256 exercises 2 grid steps
    B, D, K = 8, 32, 256

    key = jax.random.PRNGKey(0)
    k_img, k_txt, k_proto = jax.random.split(key, 3)

    def l2norm(x):
        return x / jnp.sqrt(jnp.sum(x * x, axis=-1, keepdims=True))

    # The model feeds L2-normalized embeddings to this loss (cosine-score
    # regime); normalized synthetic inputs keep exp(score/0.05) representable in
    # f32 for both the kernel and the torch-faithful reference.  bf16 inputs
    # exercise the single-pass MXU path.
    img = l2norm(jax.random.normal(k_img, (B, D), jnp.float32)).astype(jnp.bfloat16)
    txt = l2norm(jax.random.normal(k_txt, (B, D), jnp.float32)).astype(jnp.bfloat16)
    prototypes = jax.random.normal(k_proto, (K, D), jnp.float32).astype(jnp.bfloat16)

    loss = jax.block_until_ready(proto_contrastive_loss(img, txt, prototypes))

    ref = _reference(img.astype(jnp.float32), txt.astype(jnp.float32),
                     prototypes.astype(jnp.float32))
    assert jnp.isfinite(loss), "kernel produced non-finite loss"
    # Pruned-but-exact Sinkhorn scalings, per-stream max subtraction and the
    # reused softmax exponentials are algebraically identical to the torch
    # sequence but not bit-identical -> tolerance compare.
    assert jnp.allclose(loss, ref, rtol=1e-3, atol=1e-3), (loss, ref)

    print("KERNEL_OK")
</pallas_src>

<mosaic_0001>
module attributes {stable_mosaic.version = 11 : i64} {
  func.func @_proto_loss_kernel(%arg0: i32, %arg1: memref<16x32xbf16, #tpu.memory_space<vmem>>, %arg2: memref<32x128xbf16, #tpu.memory_space<vmem>>, %arg3: memref<1x1xf32, #tpu.memory_space<smem>>, %arg4: memref<16x256xf32, #tpu.memory_space<vmem>>) attributes {dimension_semantics = [#tpu.dimension_semantics<arbitrary>], iteration_bounds = array<i64: 2>, scalar_prefetch = 0 : i64, scratch_operands = 1 : i64, tpu.core_type = #tpu.core_type<tc>, window_params = [{pipeline_mode = #tpu.pipeline_mode<synchronous>, transform_indices = @transform_0, window_bounds = array<i64: 16, 32>}, {transform_indices = @transform_1, window_bounds = array<i64: 32, 128>}, {transform_indices = @transform_2, window_bounds = array<i64: 1, 1>}]} {
    %c0 = arith.constant 0 : index
    %c0_0 = arith.constant 0 : index
    %0 = vector.load %arg1[%c0, %c0_0] : memref<16x32xbf16, #tpu.memory_space<vmem>>, vector<16x32xbf16>
    %c0_1 = arith.constant 0 : index
    %c0_2 = arith.constant 0 : index
    %1 = vector.load %arg2[%c0_1, %c0_2] : memref<32x128xbf16, #tpu.memory_space<vmem>>, vector<32x128xbf16>
    %2 = arith.extf %1 : vector<32x128xbf16> to vector<32x128xf32>
    %3 = arith.mulf %2, %2 : vector<32x128xf32>
    %cst = arith.constant dense<0.000000e+00> : vector<128xf32>
    %4 = vector.multi_reduction <add>, %3, %cst [0] : vector<32x128xf32> to vector<128xf32>
    %5 = vector.shape_cast %4 : vector<128xf32> to vector<1x128xf32>
    %cst_3 = arith.constant 9.99999996E-13 : f32
    %6 = vector.broadcast %cst_3 : f32 to vector<1x128xf32>
    %7 = arith.addf %5, %6 : vector<1x128xf32>
    %8 = math.rsqrt %7 : vector<1x128xf32>
    %cst_4 = arith.constant dense<0.000000e+00> : vector<16x128xf32>
    %9 = tpu.matmul %0, %1, %cst_4 {dimension_numbers = #tpu.dot_dimension_numbers<[1], [0], [0], [1], [0, 0, 1, 1], [], []>} : vector<16x32xbf16>, vector<32x128xbf16>, vector<16x128xf32> -> vector<16x128xf32>
    %c128_i32 = arith.constant 128 : i32
    %10 = arith.muli %arg0, %c128_i32 : i32
    %11 = tpu.assume_multiple %10, 128 : i32
    %12 = vector.broadcast %8 : vector<1x128xf32> to vector<16x128xf32>
    %13 = arith.mulf %9, %12 : vector<16x128xf32>
    %c0_5 = arith.constant 0 : index
    %14 = arith.index_cast %11 : i32 to index
    %15 = vector.load %arg4[%c0_5, %14] : memref<16x256xf32, #tpu.memory_space<vmem>>, vector<16x128xf32>
    tpu.vector_store %arg4[%c0_5, %14], %13 {strides = array<i32>} : memref<16x256xf32, #tpu.memory_space<vmem>>, vector<16x128xf32>,
    %c1_i32 = arith.constant 1 : i32
    %16 = arith.cmpi eq, %arg0, %c1_i32 : i32
    %17 = arith.extui %16 : i1 to i32
    %c0_i32 = arith.constant 0 : i32
    %18 = arith.cmpi ne, %17, %c0_i32 : i32
    scf.if %18 {
      %c0_6 = arith.constant 0 : index
      %c0_7 = arith.constant 0 : index
      %19 = vector.load %arg4[%c0_6, %c0_7] : memref<16x256xf32, #tpu.memory_space<vmem>>, vector<16x256xf32>
      %20 = vector.shape_cast %19 : vector<16x256xf32> to vector<2x8x256xf32>
      %cst_8 = arith.constant 1.000000e+01 : f32
      %21 = vector.broadcast %cst_8 : f32 to vector<2x8x256xf32>
      %22 = arith.mulf %20, %21 : vector<2x8x256xf32>
      %cst_9 = arith.constant dense<0xFF800000> : vector<2x8xf32>
      %23 = vector.multi_reduction <maximumf>, %22, %cst_9 [2] : vector<2x8x256xf32> to vector<2x8xf32>
      %24 = vector.shape_cast %23 : vector<2x8xf32> to vector<2x8x1xf32>
      %25 = vector.broadcast %24 : vector<2x8x1xf32> to vector<2x8x256xf32>
      %26 = arith.subf %22, %25 : vector<2x8x256xf32>
      %27 = math.exp %26 : vector<2x8x256xf32>
      %28 = vector.broadcast %24 : vector<2x8x1xf32> to vector<2x8x256xf32>
      %29 = arith.subf %22, %28 : vector<2x8x256xf32>
      %cst_10 = arith.constant dense<0.000000e+00> : vector<2x8xf32>
      %30 = vector.multi_reduction <add>, %27, %cst_10 [2] : vector<2x8x256xf32> to vector<2x8xf32>
      %31 = vector.shape_cast %30 : vector<2x8xf32> to vector<2x8x1xf32>
      %32 = math.log %31 : vector<2x8x1xf32>
      %33 = vector.broadcast %32 : vector<2x8x1xf32> to vector<2x8x256xf32>
      %34 = arith.subf %29, %33 : vector<2x8x256xf32>
      %cst_11 = arith.constant dense<0xFF800000> : vector<2x1xf32>
      %35 = vector.multi_reduction <maximumf>, %24, %cst_11 [1] : vector<2x8x1xf32> to vector<2x1xf32>
      %36 = vector.shape_cast %35 : vector<2x1xf32> to vector<2x1x1xf32>
      %37 = arith.mulf %27, %27 : vector<2x8x256xf32>
      %38 = vector.broadcast %36 : vector<2x1x1xf32> to vector<2x8x1xf32>
      %39 = arith.subf %24, %38 : vector<2x8x1xf32>
      %cst_12 = arith.constant 2.000000e+00 : f32
      %40 = vector.broadcast %cst_12 : f32 to vector<2x8x1xf32>
      %41 = arith.mulf %40, %39 : vector<2x8x1xf32>
      %42 = math.exp %41 : vector<2x8x1xf32>
      %43 = vector.broadcast %42 : vector<2x8x1xf32> to vector<2x8x256xf32>
      %44 = arith.mulf %37, %43 : vector<2x8x256xf32>
      %cst_13 = arith.constant dense<0.000000e+00> : vector<2x256xf32>
      %45 = vector.multi_reduction <add>, %44, %cst_13 [1] : vector<2x8x256xf32> to vector<2x256xf32>
      %46 = vector.shape_cast %45 : vector<2x256xf32> to vector<2x1x256xf32>
      %cst_14 = arith.constant 1.000000e+00 : f32
      %47 = vector.broadcast %cst_14 : f32 to vector<2x1x256xf32>
      %48 = arith.divf %47, %46 : vector<2x1x256xf32>
      %49 = vector.broadcast %48 : vector<2x1x256xf32> to vector<2x8x256xf32>
      %50 = arith.mulf %44, %49 : vector<2x8x256xf32>
      %cst_15 = arith.constant dense<0.000000e+00> : vector<2x8xf32>
      %51 = vector.multi_reduction <add>, %50, %cst_15 [2] : vector<2x8x256xf32> to vector<2x8xf32>
      %52 = vector.shape_cast %51 : vector<2x8xf32> to vector<2x8x1xf32>
      %cst_16 = arith.constant 1.000000e+00 : f32
      %53 = vector.broadcast %cst_16 : f32 to vector<2x8x1xf32>
      %54 = arith.divf %53, %52 : vector<2x8x1xf32>
      %55 = vector.broadcast %54 : vector<2x8x1xf32> to vector<2x8x256xf32>
      %56 = arith.mulf %50, %55 : vector<2x8x256xf32>
      %cst_17 = arith.constant dense<0.000000e+00> : vector<2x256xf32>
      %57 = vector.multi_reduction <add>, %56, %cst_17 [1] : vector<2x8x256xf32> to vector<2x256xf32>
      %58 = vector.shape_cast %57 : vector<2x256xf32> to vector<2x1x256xf32>
      %cst_18 = arith.constant 1.000000e+00 : f32
      %59 = vector.broadcast %cst_18 : f32 to vector<2x1x256xf32>
      %60 = arith.divf %59, %58 : vector<2x1x256xf32>
      %61 = vector.broadcast %60 : vector<2x1x256xf32> to vector<2x8x256xf32>
      %62 = arith.mulf %56, %61 : vector<2x8x256xf32>
      %cst_19 = arith.constant dense<0.000000e+00> : vector<2x8xf32>
      %63 = vector.multi_reduction <add>, %62, %cst_19 [2] : vector<2x8x256xf32> to vector<2x8xf32>
      %64 = vector.shape_cast %63 : vector<2x8xf32> to vector<2x8x1xf32>
      %cst_20 = arith.constant 1.000000e+00 : f32
      %65 = vector.broadcast %cst_20 : f32 to vector<2x8x1xf32>
      %66 = arith.divf %65, %64 : vector<2x8x1xf32>
      %67 = vector.broadcast %66 : vector<2x8x1xf32> to vector<2x8x256xf32>
      %68 = arith.mulf %62, %67 : vector<2x8x256xf32>
      %cst_21 = arith.constant dense<0.000000e+00> : vector<2x256xf32>
      %69 = vector.multi_reduction <add>, %68, %cst_21 [1] : vector<2x8x256xf32> to vector<2x256xf32>
      %70 = vector.shape_cast %69 : vector<2x256xf32> to vector<2x1x256xf32>
      %cst_22 = arith.constant 1.000000e+00 : f32
      %71 = vector.broadcast %cst_22 : f32 to vector<2x1x256xf32>
      %72 = arith.divf %71, %70 : vector<2x1x256xf32>
      %73 = vector.broadcast %72 : vector<2x1x256xf32> to vector<2x8x256xf32>
      %74 = arith.mulf %68, %73 : vector<2x8x256xf32>
      %cst_23 = arith.constant dense<0.000000e+00> : vector<2x8xf32>
      %75 = vector.multi_reduction <add>, %74, %cst_23 [2] : vector<2x8x256xf32> to vector<2x8xf32>
      %76 = vector.shape_cast %75 : vector<2x8xf32> to vector<2x8x1xf32>
      %cst_24 = arith.constant 1.000000e+00 : f32
      %77 = vector.broadcast %cst_24 : f32 to vector<2x8x1xf32>
      %78 = arith.divf %77, %76 : vector<2x8x1xf32>
      %79 = vector.broadcast %78 : vector<2x8x1xf32> to vector<2x8x256xf32>
      %80 = arith.mulf %74, %79 : vector<2x8x256xf32>
      %81 = vector.extract_strided_slice %80 {offsets = [1, 0, 0], sizes = [1, 8, 256], strides = [1, 1, 1]} : vector<2x8x256xf32> to vector<1x8x256xf32>
      %82 = vector.shape_cast %81 : vector<1x8x256xf32> to vector<8x256xf32>
      %83 = vector.extract_strided_slice %34 {offsets = [0, 0, 0], sizes = [1, 8, 256], strides = [1, 1, 1]} : vector<2x8x256xf32> to vector<1x8x256xf32>
      %84 = vector.shape_cast %83 : vector<1x8x256xf32> to vector<8x256xf32>
      %85 = arith.mulf %82, %84 : vector<8x256xf32>
      %86 = vector.extract_strided_slice %80 {offsets = [0, 0, 0], sizes = [1, 8, 256], strides = [1, 1, 1]} : vector<2x8x256xf32> to vector<1x8x256xf32>
      %87 = vector.shape_cast %86 : vector<1x8x256xf32> to vector<8x256xf32>
      %88 = vector.extract_strided_slice %34 {offsets = [1, 0, 0], sizes = [1, 8, 256], strides = [1, 1, 1]} : vector<2x8x256xf32> to vector<1x8x256xf32>
      %89 = vector.shape_cast %88 : vector<1x8x256xf32> to vector<8x256xf32>
      %90 = arith.mulf %87, %89 : vector<8x256xf32>
      %91 = arith.addf %85, %90 : vector<8x256xf32>
      %92 = vector.shape_cast %91 : vector<8x256xf32> to vector<1x8x256xf32>
      %cst_25 = arith.constant dense<0.000000e+00> : vector<1xf32>
      %93 = vector.multi_reduction <add>, %92, %cst_25 [1, 2] : vector<1x8x256xf32> to vector<1xf32>
      %94 = vector.shape_cast %93 : vector<1xf32> to vector<1x1x1xf32>
      %95 = vector.extract %94[0, 0, 0] : f32 from vector<1x1x1xf32>
      %cst_26 = arith.constant -1.250000e-01 : f32
      %96 = arith.mulf %cst_26, %95 : f32
      %c0_27 = arith.constant 0 : index
      %c0_28 = arith.constant 0 : index
      %97 = memref.load %arg3[%c0_27, %c0_28] : memref<1x1xf32, #tpu.memory_space<smem>>
      memref.store %96, %arg3[%c0_27, %c0_28] : memref<1x1xf32, #tpu.memory_space<smem>>
    } else {
    }
    return
  }
  func.func @transform_0(%arg0: i32) -> (i32, i32) {
    %c0_i32 = arith.constant 0 : i32
    %c0_i32_0 = arith.constant 0 : i32
    %c0_i32_1 = arith.constant 0 : i32
    return %c0_i32, %c0_i32_0 : i32, i32
  }
  func.func @transform_1(%arg0: i32) -> (i32, i32) {
    %c0_i32 = arith.constant 0 : i32
    %c0_i32_0 = arith.constant 0 : i32
    return %c0_i32, %arg0 : i32, i32
  }
  func.func @transform_2(%arg0: i32) -> (i32, i32) {
    %c0_i32 = arith.constant 0 : i32
    %c0_i32_0 = arith.constant 0 : i32
    %c0_i32_1 = arith.constant 0 : i32
    return %c0_i32, %c0_i32_0 : i32, i32
  }
}

</mosaic_0001>

<bundles_post_ra>
// kernel: tpu_custom_call.1
= control target key start
LH: loop header
LB: loop body
LE: loop exit
PB: predicated region body
PF: predicated region fallthrough
CT: control target
= control target key end

     0   :  { %7 = vsyncpa [#allocation4], 0  ;;  %s1279_s0 = inlined_call_operand.hbm [shape: bf16[16,32], index: 0, kind: input, shape index: {}]   ;;  %s1280_s1 = inlined_call_operand.hbm [shape: bf16[32,256], index: 1, kind: input, shape index: {}]   ;;  %s1281_s2 = inlined_call_operand.hbm [shape: f32[1,1], index: 2, kind: output, shape index: {}]  }
   0x1   :  { %8 = vsyncpa [#allocation7], 0 }
   0x2   :  { %10 = vsyncpa [#allocation7 + $0x1], 0 }
   0x3   :  { %11 = vsyncpa [#allocation5], 0  ;;  %s1080_s9 = smov 0   ;;  %s1082_s10 = smov 0  }
   0x4   :  { %s1084_s11 = smov 0   ;;  %s1086_s12 = smov 0  }
   0x5 LB: > { %s1099_s13 = sadd.s32 4294967295, %s1058_s12   ;;  %p58_p0 = scmp.ne.s32.totalorder %s1050_s10, %s1046_s9  ;;  %s1058_s12 = sphi %s1086_s12, %s1288_s12   ;;  %s1054_s11 = sphi %s1084_s11, %s1287_s11   ;;  %s1050_s10 = sphi %s1082_s10, %s1286_s10   ;;  %s1046_s9 = sphi %s1080_s9, %s1285_s9  }
   0x6   : > { %p59_p1 = scmp.eq.s32.totalorder %s1099_s13, 0  ;;  %p795_p2 = scmp.ge.s32.totalorder %s1058_s12, 1 }
   0x7   : > { %p90_p3 = scmp.lt.s32.totalorder %s1058_s12, 3  ;;  %s101_s17 = sshll.u32 %s1279_s0, 4  ;;  %s102_s17 = int_to_ptr.hbm [resolvable:$true] %s101_s17 }
   0x8   : > { %p1107_p4 = por %p59_p1, %p58_p0  ;;  %s1060_s19 = smov [#allocation3]  }
   0x9   : > { %p1114_p5 = pnand %p795_p2, %p90_p3  ;;  %s103_s20 = sshll.u32 %s1060_s19, 4  ;;  %s104_s20 = int_to_ptr.vmem [resolvable:$true] %s103_s20 }
   0xa   : > { %s1123_s21 = sadd.s32 1, %s1058_s12   ;;  %s1061_s22 = smov 64  }
   0xb   : > { %p838_p6 = pneg %p1114_p5  ;;  %s1062_s23 = smov 4  }
   0xc   : > { %s42_s24 = ssub.s32 %s1058_s12, %s1123_s21  ;;  %s45_s25 = sadd.s32 1, %s1054_s11 }
   0xd   : > { %p839_p7 = pnand %p838_p6, %p59_p1  ;;  %p43_p8 = scmp.eq.s32.totalorder %s42_s24, 0 }
   0xe   : > { %p52_p9 = scmp.ne.s32.totalorder %s1054_s11, %s1050_s10  ;;  %p53_p10 = scmp.eq.s32.totalorder %s1058_s12, 0 }
   0xf   : > { %841 = dma.hbm_to_vmem [thread:$0]  (!%p839_p7), %s102_s17, 128, %s104_s20, [#allocation4], %s1061_s22, %s1061_s22, %s1062_s23  }
  0x10   : > { %p847_p11 = scmp.lt.s32.totalorder %s1058_s12, 2  ;;  %p54_p12 = por %p53_p10, %p52_p9 }
  0x11   : > { %s1136_s26 = scalar_select %p43_p8, %s1054_s11, %s45_s25  }
  0x12   : > { %s117_s27 = sand.u32 1, %s1054_s11   ;;  %s799_s29 = sshll.u32 %s1058_s12, 2 }
  0x13   : > { %s798_s28 = sshll.u32 %s117_s27, 4  ;;  %s125_s4 = scalar_lea.hbm %s1280_s1, %s799_s29 }
  0x14   : > { %s121_s5 = scalar_lea.vmem [#allocation6], %s798_s28  ;;  %s126_s7 = sshll.u32 %s125_s4, 4  ;;  %s127_s7 = int_to_ptr.hbm [resolvable:$true] %s126_s7 }
  0x15   : > { %s128_s6 = sshll.u32 %s121_s5, 4  ;;  %p1143_p13 = pnand %p847_p11, %p54_p12  ;;  %s129_s6 = int_to_ptr.vmem [resolvable:$true] %s128_s6 }
  0x16   : > { %s118_s9 = scalar_lea.sflag [#allocation7], %s117_s27  ;;  %s972_s15 = sshra.s32 %s127_s7, 4  ;;  %s973_s15 = int_to_ptr.hbm [resolvable:$true] %s972_s15 }
  0x17   : > { %s974_s16 = scalar_lea.hbm %s973_s15, 16  ;;  %p976_p2 = pneg %p1143_p13 }
  0x18   : > { %p975_p0 = scmp.ne.s32.totalorder %s973_s15, %s974_s16  ;;  %s979_s19 = scalar_lea.hbm %s1280_s1, 32 }
  0x19   : > { %p980_p7 = scmp.lt.s32.totalorder %s973_s15, %s1280_s1  ;;  %p981_p8 = scmp.lt.s32.totalorder %s979_s19, %s974_s16 }
  0x1a   : > { %p977_p3 = pnand %p976_p2, %p975_p0 }
  0x1b   : > { %p982_p9 = por %p981_p8, %p980_p7 }
  0x1c   : > { %p978_p6 = pneg %p977_p3 }
  0x1e   : > { %p983_p10 = pnand %p982_p9, %p978_p6 }
  0x20   : > { %986 = shalt.err (!%p983_p10)
}
  0x21   : > { %s1063_s25 = smov 128   ;;  %140 = sbr.rel (%p1114_p5) target bundleno = 1050 (0x41a), region = 28 }
  0x22   : > { %845 = dma.hbm_to_vmem [thread:$0]  (!%p1143_p13), %s127_s7, 256, %s129_s6, %s118_s9, %s1063_s25, %s1061_s22, %s1062_s23  }
  0x26   : > { %1033 = dma.done.wait (%p59_p1), [#allocation4], 128  }
  0x27   : > { %1035 = vsyncadd (%p59_p1), [#allocation4], 4294967168  ;;  %s147_s27 = sand.u32 1, %s1050_s10  }
  0x28   : > { %s802_s28 = sshll.u32 %s147_s27, 4  ;;  %s148_s29 = scalar_lea.sflag [#allocation7], %s147_s27 }
  0x29   : > { %s151_s30 = scalar_lea.vmem [#allocation6], %s802_s28 }
  0x2a   : > { %1037 = dma.done.wait (%p1107_p4), %s148_s29, 256  }
  0x2b   : > { %1039 = vsyncadd (%p1107_p4), %s148_s29, 4294967040  ;;  %v825_v0 = vld [vmem:[%s151_s30 + $0x8] sm:$0xff]  ;;  %v824_v1 = vld [vmem:[%s151_s30] sm:$0xff]  ;;  %vm220_vm0 = vcmask 261120   ;;  %s816_s14 = sshll.u32 %s1099_s13, 7  ;;  %p818_p1 = scmp.ne.s32.totalorder %s1099_s13, 1 }
  0x2c   : > { %230 = vmatpush.bf16.msra.mxu0 %v825_v0  ;;  %v823_v2 = vld [vmem:[#allocation3] sm:$0xff]  ;;  %v171_v3 = vld [vmem:[%s151_s30] sm:$0xff]   ;;  %s241_s18 = sshra.s32 %s816_s14, 7 }
  0x2d   : > { %v175_v4 = vunpack.c.l.bf16 %v171_v3  ;;  %v176_v5 = vunpack.c.h.bf16 %v171_v3  ;;  %v173_v6 = vld [vmem:[%s151_s30 + $0x8] sm:$0xff]   ;;  %s817_s22 = sshll.u32 %s241_s18, 3 }
  0x2e   : > { %v177_v7 = vunpack.c.l.bf16 %v173_v6  ;;  %v178_v10 = vunpack.c.h.bf16 %v173_v6  ;;  %s244_s23 = scalar_lea.vmem [#allocation2], %s817_s22 }
  0x2f   : > { %v179_v8 = vmul.f32 %v175_v4, %v175_v4  ;;  %v180_v9 = vmul.f32 %v176_v5, %v176_v5 }
  0x30   : > { %231 = vmatpush.bf16.msra.mxu0 %v824_v1  ;;  %v181_v11 = vmul.f32 %v177_v7, %v177_v7  ;;  %v182_v13 = vmul.f32 %v178_v10, %v178_v10 }
  0x31   : > { %v183_v12 = vadd.f32 %v180_v9, %v179_v8 }
  0x33   : > { %815 = vmatmul.msk.bf16.vlgmr.msra.gmra.mxu0 %vm220_vm0, %v823_v2  ;;  %v184_v14 = vadd.f32 %v183_v12, %v181_v11 }
  0x35   : > { %v185_v15 = vadd.f32 %v184_v14, %v182_v13 }
  0x37   : > { %v186_v16 = vrot.slane %v185_v15, 4 }
  0x39   : > { %v187_v17 = vadd.f32 %v186_v16, %v185_v15 }
  0x3b   : > { %v188_v18 = vrot.slane %v187_v17, 2 }
  0x3d   : > { %v189_v19 = vadd.f32 %v188_v18, %v187_v17 }
  0x3f   : > { %v190_v20 = vrot.slane %v189_v19, 1 }
  0x41   : > { %v191_v21 = vadd.f32 %v190_v20, %v189_v19 }
  0x43   : > { %v192_v22 = vadd.f32 1e-12, %v191_v21 }
  0x45   : > { %888 = vrsqrt.f32 %v192_v22  ;;  %vm199_vm1 = vweird.f32 %v192_v22 }
  0x4b   : > { %v889_v23 = vpop.eup %888 }
  0x4c   : > { %v194_v24 = vmul.f32 %v889_v23, %v192_v22  ;;  %vm200_vm2 = vweird.f32 %v889_v23 }
  0x4d   : > { %vm201_vm3 = vmor %vm199_vm1, %vm200_vm2 }
  0x4e   : > { %v195_v25 = vmul.f32 %v889_v23, %v194_v24 }
  0x50   : > { %v196_v26 = vmul.f32 0.5, %v195_v25 }
  0x52   : > { %v197_v27 = vsub.f32 1.5, %v196_v26 }
  0x54   : > { %v198_v28 = vmul.f32 %v889_v23, %v197_v27 }
  0x56   : > { %v202_v29 = vsel %vm201_vm3, %v889_v23, %v198_v28 }
  0xb0   : > { %v233_v30 = vpop.f32.mrf.mxu0 }
  0xb1   : > { %v239_v31 = vmul.f32 %v233_v30, %v202_v29 }
  0xb3   : > { %245 = vst [vmem:[%s244_s23] sm:$0xff] %v239_v31 }
  0xb7   : > { %250 = sbr.rel (%p818_p1) target bundleno = 1044 (0x414), region = 40 }
  0xb8   : > { %v235_v32 = vpop.f32.mrf.mxu0 }
  0xb9   : > { %v240_v33 = vmul.f32 %v235_v32, %v202_v29 }
  0xbb   : > { %246 = vst [vmem:[%s244_s23 + $0x10] sm:$0xff] %v240_v33 }
  0xc2   : > { %v251_v34 = vld [vmem:[#allocation2] sm:$0xff]  ;;  %v252_v35 = vld [vmem:[#allocation2 + $0x8] sm:$0xff]  ;;  %v253_v38 = vld [vmem:[#allocation2 + $0x10] sm:$0xff] }
  0xc3   : > { %v255_v36 = vmul.f32 10.0, %v251_v34  ;;  %v256_v37 = vmul.f32 10.0, %v252_v35  ;;  %v254_v39 = vld [vmem:[#allocation2 + $0x18] sm:$0xff]  ;;  %v257_v41 = vmul.f32 10.0, %v253_v38 }
  0xc4   : > { %v258_v42 = vmul.f32 10.0, %v254_v39 }
  0xc5   : > { %v259_v40 = vmax.f32 %v255_v36, %v256_v37 }
  0xc6   : > { %v262_v43 = vmax.f32 %v257_v41, %v258_v42 }
  0xc7   : > { %260 = vmax.xlane.f32.xlu0 %v259_v40 }
  0xcf   : > { %263 = vmax.xlane.f32.xlu0 %v262_v43 }
 0x13a   : > { %v261_v44 = vpop.xlane.xlu0 %260 }
 0x13b   : > { %v1172_v45 = vsub.f32 %v255_v36, %v261_v44  ;;  %v1174_v46 = vsub.f32 %v256_v37, %v261_v44  ;;  %v291_v47 = vrot.slane %v261_v44, 4 }
 0x13d   : > { %v269_v48 = vmul.f32 1.442695, %v1172_v45  ;;  %v271_v49 = vmul.f32 1.442695, %v1174_v46  ;;  %v292_v50 = vmax.f32 %v261_v44, %v291_v47 }
 0x13f   : > { %890 = vpow2.f32 %v269_v48  ;;  %v293_v51 = vrot.slane %v292_v50, 2 }
 0x140   : > { %892 = vpow2.f32 %v271_v49 }
 0x141   : > { %v294_v52 = vmax.f32 %v292_v50, %v293_v51 }
 0x142   : > { %v264_v53 = vpop.xlane.xlu0 %263 }
 0x143   : > { %v295_v54 = vrot.slane %v294_v52, 1  ;;  %v1178_v55 = vsub.f32 %v257_v41, %v264_v53  ;;  %v1180_v56 = vsub.f32 %v258_v42, %v264_v53  ;;  %v297_v57 = vrot.slane %v264_v53, 4 }
 0x145   : > { %v891_v58 = vpop.eup %890  ;;  %v296_v59 = vmax.f32 %v294_v52, %v295_v54  ;;  %v273_v60 = vmul.f32 1.442695, %v1178_v55  ;;  %v275_v61 = vmul.f32 1.442695, %v1180_v56  ;;  %v298_v62 = vmax.f32 %v264_v53, %v297_v57 }
 0x146   : > { %v893_v63 = vpop.eup %892  ;;  %v303_v13 = vmul.f32 %v891_v58, %v891_v58 }
 0x147   : > { %v307_v0 = vsub.f32 %v261_v44, %v296_v59  ;;  %894 = vpow2.f32 %v273_v60  ;;  %v299_v1 = vrot.slane %v298_v62, 2  ;;  %v1184_v2 = vadd.f32 %v893_v63, %v891_v58 }
 0x148   : > { %896 = vpow2.f32 %v275_v61  ;;  %v304_v14 = vmul.f32 %v893_v63, %v893_v63 }
 0x149   : > { %v309_v3 = vmul.f32 2.0, %v307_v0  ;;  %v300_v4 = vmax.f32 %v298_v62, %v299_v1 }
 0x14b   : > { %v311_v5 = vmul.f32 1.442695, %v309_v3  ;;  %v301_v6 = vrot.slane %v300_v4, 1 }
 0x14d   : > { %v895_v7 = vpop.eup %894  ;;  %898 = vpow2.f32 %v311_v5  ;;  %v302_v8 = vmax.f32 %v300_v4, %v301_v6 }
 0x14e   : > { %v897_v9 = vpop.eup %896  ;;  %v305_v25 = vmul.f32 %v895_v7, %v895_v7 }
 0x14f   : > { %v308_v10 = vsub.f32 %v264_v53, %v302_v8  ;;  %v1186_v11 = vadd.f32 %v897_v9, %v895_v7  ;;  %v306_v26 = vmul.f32 %v897_v9, %v897_v9 }
 0x151   : > { %v310_v12 = vmul.f32 2.0, %v308_v10 }
 0x153   : > { %v899_v15 = vpop.eup %898  ;;  %v313_v16 = vmul.f32 1.442695, %v310_v12 }
 0x154   : > { %v1188_v17 = vmul.f32 %v899_v15, %v303_v13  ;;  %v1190_v18 = vmul.f32 %v899_v15, %v304_v14 }
 0x155   : > { %900 = vpow2.f32 %v313_v16 }
 0x156   : > { %v319_v19 = vrot.slane %v1188_v17, 4  ;;  %v325_v20 = vrot.slane %v1190_v18, 4 }
 0x158   : > { %v320_v21 = vadd.f32 %v319_v19, %v1188_v17  ;;  %v326_v22 = vadd.f32 %v325_v20, %v1190_v18 }
 0x15a   : > { %v321_v23 = vrot.slane %v320_v21, 2  ;;  %v327_v24 = vrot.slane %v326_v22, 2 }
 0x15b   : > { %v901_v27 = vpop.eup %900 }
 0x15c   : > { %v322_v28 = vadd.f32 %v321_v23, %v320_v21  ;;  %v328_v29 = vadd.f32 %v327_v24, %v326_v22  ;;  %v1196_v30 = vmul.f32 %v901_v27, %v305_v25  ;;  %v1198_v31 = vmul.f32 %v901_v27, %v306_v26 }
 0x15e   : > { %v323_v32 = vrot.slane %v322_v28, 1  ;;  %v329_v33 = vrot.slane %v328_v29, 1  ;;  %v331_v34 = vrot.slane %v1196_v30, 4  ;;  %v337_v35 = vrot.slane %v1198_v31, 4 }
 0x160   : > { %v324_v36 = vadd.f32 %v323_v32, %v322_v28  ;;  %v330_v37 = vadd.f32 %v329_v33, %v328_v29  ;;  %v332_v38 = vadd.f32 %v331_v34, %v1196_v30  ;;  %v338_v39 = vadd.f32 %v337_v35, %v1198_v31 }
 0x162   : > { %902 = vrcp.f32 %v324_v36  ;;  %v333_v40 = vrot.slane %v332_v38, 2  ;;  %v339_v41 = vrot.slane %v338_v39, 2  ;;  %v352_v57 = vand.u32 2147483647, %v324_v36 }
 0x163   : > { %904 = vrcp.f32 %v330_v37  ;;  %v354_v58 = vand.u32 2147483648, %v324_v36  ;;  %v369_v61 = vand.u32 2147483648, %v330_v37  ;;  %v367_v63 = vand.u32 2147483647, %v330_v37 }
 0x164   : > { %v334_v42 = vadd.f32 %v333_v40, %v332_v38  ;;  %v340_v43 = vadd.f32 %v339_v41, %v338_v39  ;;  %vm348_vm6 = vweird.f32 %v324_v36  ;;  %vm363_vm8 = vweird.f32 %v330_v37 }
 0x165   : > { %v355_v1 = vor.u32 1.1754944e-38, %v354_v58  ;;  %vm353_vm9 = vcmp.eq.f32.partialorder %v352_v57, 8.507059e+37  ;;  %v370_v5 = vor.u32 1.1754944e-38, %v369_v61  ;;  %vm368_vm11 = vcmp.eq.f32.partialorder %v367_v63, 8.507059e+37 }
 0x166   : > { %v335_v47 = vrot.slane %v334_v42, 1  ;;  %v341_v48 = vrot.slane %v340_v43, 1 }
 0x168   : > { %v903_v44 = vpop.eup %902  ;;  %v336_v52 = vadd.f32 %v335_v47, %v334_v42  ;;  %v342_v53 = vadd.f32 %v341_v48, %v340_v43 }
 0x169   : > { %v905_v49 = vpop.eup %904  ;;  %v344_v50 = vmul.f32 %v903_v44, %v324_v36  ;;  %vm349_vm4 = vweird.f32 %v903_v44 }
 0x16a   : > { %v359_v51 = vmul.f32 %v905_v49, %v330_v37  ;;  %906 = vrcp.f32 %v336_v52  ;;  %vm364_vm5 = vweird.f32 %v905_v49  ;;  %vm350_vm7 = vmor %vm348_vm6, %vm349_vm4  ;;  %v384_v20 = vand.u32 2147483648, %v336_v52 }
 0x16b   : > { %v345_v54 = vsub.f32 1.0, %v344_v50  ;;  %908 = vrcp.f32 %v342_v53  ;;  %vm365_vm10 = vmor %vm363_vm8, %vm364_vm5  ;;  %v382_v23 = vand.u32 2147483647, %v336_v52  ;;  %v399_v24 = vand.u32 2147483648, %v342_v53 }
 0x16c   : > { %v360_v59 = vsub.f32 1.0, %v359_v51  ;;  %v397_v26 = vand.u32 2147483647, %v342_v53  ;;  %vm378_vm14 = vweird.f32 %v336_v52  ;;  %vm393_vm0 = vweird.f32 %v342_v53 }
 0x16d   : > { %v346_v60 = vmul.f32 %v903_v44, %v345_v54  ;;  %vm383_vm1 = vcmp.eq.f32.partialorder %v382_v23, 8.507059e+37  ;;  %v400_v29 = vor.u32 1.1754944e-38, %v399_v24 }
 0x16e   : > { %v361_v62 = vmul.f32 %v905_v49, %v360_v59  ;;  %vm398_vm3 = vcmp.eq.f32.partialorder %v397_v26, 8.507059e+37 }
 0x16f   : > { %v347_v0 = vadd.f32 %v903_v44, %v346_v60 }
 0x170   : > { %v362_v3 = vadd.f32 %v905_v49, %v361_v62  ;;  %v907_v6 = vpop.eup %906 }
 0x171   : > { %v351_v4 = vsel %vm350_vm7, %v903_v44, %v347_v0  ;;  %v909_v9 = vpop.eup %908  ;;  %v374_v13 = vmul.f32 %v907_v6, %v336_v52  ;;  %vm379_vm12 = vweird.f32 %v907_v6 }
 0x172   : > { %v356_v7 = vsel %vm353_vm9, %v355_v1, %v351_v4  ;;  %v366_v8 = vsel %vm365_vm10, %v905_v49, %v362_v3  ;;  %v389_v15 = vmul.f32 %v909_v9, %v342_v53  ;;  %vm394_vm13 = vweird.f32 %v909_v9  ;;  %vm380_vm15 = vmor %vm378_vm14, %vm379_vm12 }
 0x173   : > { %v371_v10 = vsel %vm368_vm11, %v370_v5, %v366_v8  ;;  %v403_v12 = vmul.f32 %v356_v7, %v1188_v17  ;;  %v375_v16 = vsub.f32 1.0, %v374_v13  ;;  %v385_v17 = vor.u32 1.1754944e-38, %v384_v20  ;;  %vm395_vm2 = vmor %vm393_vm0, %vm394_vm13 }
 0x174   : > { %v404_v14 = vmul.f32 %v371_v10, %v1190_v18  ;;  %v390_v21 = vsub.f32 1.0, %v389_v15 }
 0x175   : > { %v376_v22 = vmul.f32 %v907_v6, %v375_v16 }
 0x176   : > { %v407_v19 = vadd.f32 %v404_v14, %v403_v12  ;;  %v391_v25 = vmul.f32 %v909_v9, %v390_v21 }
 0x177   : > { %v377_v27 = vadd.f32 %v907_v6, %v376_v22 }
 0x178   : > { %408 = vadd.xlane.f32.xlu1 %v407_v19  ;;  %v392_v28 = vadd.f32 %v909_v9, %v391_v25 }
 0x179   : > { %v381_v18 = vsel %vm380_vm15, %v907_v6, %v377_v27 }
 0x17a   : > { %v386_v32 = vsel %vm383_vm1, %v385_v17, %v381_v18  ;;  %v396_v33 = vsel %vm395_vm2, %v909_v9, %v392_v28 }
 0x17b   : > { %v401_v34 = vsel %vm398_vm3, %v400_v29, %v396_v33  ;;  %v405_v35 = vmul.f32 %v386_v32, %v1196_v30 }
 0x17c   : > { %v406_v36 = vmul.f32 %v401_v34, %v1198_v31 }
 0x17e   : > { %v410_v37 = vadd.f32 %v406_v36, %v405_v35 }
 0x180   : > { %411 = vadd.xlane.f32.xlu1 %v410_v37 }
 0x1eb   : > { %v409_v38 = vpop.xlane.xlu1 %408 }
 0x1ec   : > { %910 = vrcp.f32 %v409_v38  ;;  %v424_v43 = vand.u32 2147483648, %v409_v38  ;;  %v422_v47 = vand.u32 2147483647, %v409_v38  ;;  %vm418_vm5 = vweird.f32 %v409_v38 }
 0x1ee   : > { %v425_v49 = vor.u32 1.1754944e-38, %v424_v43  ;;  %vm423_vm7 = vcmp.eq.f32.partialorder %v422_v47, 8.507059e+37 }
 0x1f2   : > { %v911_v39 = vpop.eup %910 }
 0x1f3   : > { %v414_v40 = vmul.f32 %v911_v39, %v409_v38  ;;  %v412_v42 = vpop.xlane.xlu1 %411  ;;  %vm419_vm4 = vweird.f32 %v911_v39 }
 0x1f4   : > { %912 = vrcp.f32 %v412_v42  ;;  %vm420_vm6 = vmor %vm418_vm5, %vm419_vm4  ;;  %v437_v59 = vand.u32 2147483647, %v412_v42  ;;  %v439_v60 = vand.u32 2147483648, %v412_v42  ;;  %vm433_vm9 = vweird.f32 %v412_v42 }
 0x1f5   : > { %v415_v41 = vsub.f32 1.0, %v414_v40 }
 0x1f6   : > { %v440_v4 = vor.u32 1.1754944e-38, %v439_v60  ;;  %vm438_vm11 = vcmp.eq.f32.partialorder %v437_v59, 8.507059e+37 }
 0x1f7   : > { %v416_v44 = vmul.f32 %v911_v39, %v415_v41 }
 0x1f9   : > { %v417_v48 = vadd.f32 %v911_v39, %v416_v44 }
 0x1fa   : > { %v913_v31 = vpop.eup %912 }
 0x1fb   : > { %v421_v30 = vsel %vm420_vm6, %v911_v39, %v417_v48  ;;  %v429_v51 = vmul.f32 %v913_v31, %v412_v42  ;;  %vm434_vm8 = vweird.f32 %v913_v31 }
 0x1fc   : > { %v426_v50 = vsel %vm423_vm7, %v425_v49, %v421_v30  ;;  %vm435_vm10 = vmor %vm433_vm9, %vm434_vm8 }
 0x1fd   : > { %v1208_v52 = vmul.f32 %v426_v50, %v403_v12  ;;  %v1210_v53 = vmul.f32 %v426_v50, %v404_v14  ;;  %v430_v54 = vsub.f32 1.0, %v429_v51 }
 0x1ff   : > { %v447_v57 = vrot.slane %v1208_v52, 4  ;;  %v453_v58 = vrot.slane %v1210_v53, 4  ;;  %v431_v61 = vmul.f32 %v913_v31, %v430_v54 }
 0x201   : > { %v448_v62 = vadd.f32 %v447_v57, %v1208_v52  ;;  %v454_v63 = vadd.f32 %v453_v58, %v1210_v53  ;;  %v432_v0 = vadd.f32 %v913_v31, %v431_v61 }
 0x203   : > { %v449_v1 = vrot.slane %v448_v62, 2  ;;  %v455_v3 = vrot.slane %v454_v63, 2  ;;  %v436_v7 = vsel %vm435_vm10, %v913_v31, %v432_v0 }
 0x204   : > { %v441_v8 = vsel %vm438_vm11, %v440_v4, %v436_v7 }
 0x205   : > { %v450_v5 = vadd.f32 %v449_v1, %v448_v62  ;;  %v456_v6 = vadd.f32 %v455_v3, %v454_v63  ;;  %v1216_v12 = vmul.f32 %v441_v8, %v405_v35  ;;  %v1218_v13 = vmul.f32 %v441_v8, %v406_v36 }
 0x207   : > { %v451_v9 = vrot.slane %v450_v5, 1  ;;  %v457_v10 = vrot.slane %v456_v6, 1  ;;  %v459_v16 = vrot.slane %v1216_v12, 4  ;;  %v465_v19 = vrot.slane %v1218_v13, 4 }
 0x209   : > { %v452_v14 = vadd.f32 %v451_v9, %v450_v5  ;;  %v458_v15 = vadd.f32 %v457_v10, %v456_v6  ;;  %v460_v20 = vadd.f32 %v459_v16, %v1216_v12  ;;  %v466_v21 = vadd.f32 %v465_v19, %v1218_v13 }
 0x20b   : > { %914 = vrcp.f32 %v452_v14  ;;  %v461_v22 = vrot.slane %v460_v20, 2  ;;  %v467_v23 = vrot.slane %v466_v21, 2  ;;  %v482_v33 = vand.u32 2147483648, %v452_v14 }
 0x20c   : > { %916 = vrcp.f32 %v458_v15  ;;  %v480_v38 = vand.u32 2147483647, %v452_v14  ;;  %v497_v39 = vand.u32 2147483648, %v458_v15  ;;  %v495_v41 = vand.u32 2147483647, %v458_v15 }
 0x20d   : > { %v462_v25 = vadd.f32 %v461_v22, %v460_v20  ;;  %v468_v26 = vadd.f32 %v467_v23, %v466_v21  ;;  %vm476_vm14 = vweird.f32 %v452_v14  ;;  %v483_v43 = vor.u32 1.1754944e-38, %v482_v33 }
 0x20e   : > { %vm491_vm0 = vweird.f32 %v458_v15  ;;  %vm481_vm1 = vcmp.eq.f32.partialorder %v480_v38, 8.507059e+37  ;;  %v498_v48 = vor.u32 1.1754944e-38, %v497_v39  ;;  %vm496_vm3 = vcmp.eq.f32.partialorder %v495_v41, 8.507059e+37 }
 0x20f   : > { %v463_v18 = vrot.slane %v462_v25, 1  ;;  %v469_v29 = vrot.slane %v468_v26, 1 }
 0x211   : > { %v915_v24 = vpop.eup %914  ;;  %v464_v35 = vadd.f32 %v463_v18, %v462_v25  ;;  %v470_v36 = vadd.f32 %v469_v29, %v468_v26 }
 0x212   : > { %v917_v27 = vpop.eup %916  ;;  %v472_v17 = vmul.f32 %v915_v24, %v452_v14  ;;  %vm477_vm12 = vweird.f32 %v915_v24 }
 0x213   : > { %v487_v28 = vmul.f32 %v917_v27, %v458_v15  ;;  %vm492_vm13 = vweird.f32 %v917_v27  ;;  %918 = vrcp.f32 %v464_v35  ;;  %vm478_vm15 = vmor %vm476_vm14, %vm477_vm12  ;;  %v512_v62 = vand.u32 2147483648, %v464_v35 }
 0x214   : > { %v473_v32 = vsub.f32 1.0, %v472_v17  ;;  %920 = vrcp.f32 %v470_v36  ;;  %vm493_vm2 = vmor %vm491_vm0, %vm492_vm13  ;;  %v510_v1 = vand.u32 2147483647, %v464_v35  ;;  %v527_v3 = vand.u32 2147483648, %v470_v36 }
 0x215   : > { %v488_v34 = vsub.f32 1.0, %v487_v28  ;;  %v525_v5 = vand.u32 2147483647, %v470_v36  ;;  %vm506_vm6 = vweird.f32 %v464_v35  ;;  %vm521_vm8 = vweird.f32 %v470_v36 }
 0x216   : > { %v474_v37 = vmul.f32 %v915_v24, %v473_v32  ;;  %vm511_vm9 = vcmp.eq.f32.partialorder %v510_v1, 8.507059e+37  ;;  %v528_v8 = vor.u32 1.1754944e-38, %v527_v3 }
 0x217   : > { %v489_v40 = vmul.f32 %v917_v27, %v488_v34  ;;  %vm526_vm11 = vcmp.eq.f32.partialorder %v525_v5, 8.507059e+37 }
 0x218   : > { %v475_v42 = vadd.f32 %v915_v24, %v474_v37 }
 0x219   : > { %v490_v44 = vadd.f32 %v917_v27, %v489_v40  ;;  %v919_v51 = vpop.eup %918 }
 0x21a   : > { %v479_v47 = vsel %vm478_vm15, %v915_v24, %v475_v42  ;;  %v921_v57 = vpop.eup %920  ;;  %v502_v58 = vmul.f32 %v919_v51, %v464_v35  ;;  %vm507_vm4 = vweird.f32 %v919_v51 }
 0x21b   : > { %v484_v49 = vsel %vm481_vm1, %v483_v43, %v479_v47  ;;  %v494_v30 = vsel %vm493_vm2, %v917_v27, %v490_v44  ;;  %v517_v60 = vmul.f32 %v921_v57, %v470_v36  ;;  %vm522_vm5 = vweird.f32 %v921_v57  ;;  %vm508_vm7 = vmor %vm506_vm6, %vm507_vm4 }
 0x21c   : > { %v499_v31 = vsel %vm496_vm3, %v498_v48, %v494_v30  ;;  %v531_v50 = vmul.f32 %v484_v49, %v1208_v52  ;;  %v503_v61 = vsub.f32 1.0, %v502_v58  ;;  %v513_v52 = vor.u32 1.1754944e-38, %v512_v62  ;;  %vm523_vm10 = vmor %vm521_vm8, %vm522_vm5 }
 0x21d   : > { %v532_v54 = vmul.f32 %v499_v31, %v1210_v53  ;;  %v518_v63 = vsub.f32 1.0, %v517_v60 }
 0x21e   : > { %v504_v0 = vmul.f32 %v919_v51, %v503_v61 }
 0x21f   : > { %v535_v59 = vadd.f32 %v532_v54, %v531_v50  ;;  %v519_v4 = vmul.f32 %v921_v57, %v518_v63 }
 0x220   : > { %v505_v6 = vadd.f32 %v919_v51, %v504_v0 }
 0x221   : > { %536 = vadd.xlane.f32.xlu2 %v535_v59  ;;  %v520_v53 = vadd.f32 %v921_v57, %v519_v4 }
 0x222   : > { %v509_v7 = vsel %vm508_vm7, %v919_v51, %v505_v6 }
 0x223   : > { %v514_v9 = vsel %vm511_vm9, %v513_v52, %v509_v7  ;;  %v524_v10 = vsel %vm523_vm10, %v921_v57, %v520_v53 }
 0x224   : > { %v529_v14 = vsel %vm526_vm11, %v528_v8, %v524_v10  ;;  %v533_v15 = vmul.f32 %v514_v9, %v1216_v12 }
 0x225   : > { %v534_v16 = vmul.f32 %v529_v14, %v1218_v13 }
 0x227   : > { %v538_v19 = vadd.f32 %v534_v16, %v533_v15 }
 0x229   : > { %539 = vadd.xlane.f32.xlu2 %v538_v19 }
 0x231   : > { %278 = vadd.xlane.f32.xlu2 %v1184_v2 }
 0x294   : > { %v537_v20 = vpop.xlane.xlu2 %536 }
 0x295   : > { %922 = vrcp.f32 %v537_v20  ;;  %v552_v24 = vand.u32 2147483648, %v537_v20  ;;  %v550_v26 = vand.u32 2147483647, %v537_v20  ;;  %vm546_vm13 = vweird.f32 %v537_v20 }
 0x297   : > { %v553_v12 = vor.u32 1.1754944e-38, %v552_v24  ;;  %vm551_vm15 = vcmp.eq.f32.partialorder %v550_v26, 8.507059e+37 }
 0x29b   : > { %v923_v21 = vpop.eup %922 }
 0x29c   : > { %v542_v22 = vmul.f32 %v923_v21, %v537_v20  ;;  %vm547_vm12 = vweird.f32 %v923_v21  ;;  %v540_v27 = vpop.xlane.xlu2 %539 }
 0x29d   : > { %924 = vrcp.f32 %v540_v27  ;;  %vm548_vm14 = vmor %vm546_vm13, %vm547_vm12  ;;  %v565_v38 = vand.u32 2147483647, %v540_v27  ;;  %v567_v39 = vand.u32 2147483648, %v540_v27  ;;  %vm561_vm1 = vweird.f32 %v540_v27 }
 0x29e   : > { %v543_v23 = vsub.f32 1.0, %v542_v22 }
 0x29f   : > { %v568_v48 = vor.u32 1.1754944e-38, %v567_v39  ;;  %vm566_vm3 = vcmp.eq.f32.partialorder %v565_v38, 8.507059e+37 }
 0x2a0   : > { %v544_v25 = vmul.f32 %v923_v21, %v543_v23 }
 0x2a2   : > { %v545_v17 = vadd.f32 %v923_v21, %v544_v25 }
 0x2a3   : > { %v925_v29 = vpop.eup %924 }
 0x2a4   : > { %v549_v13 = vsel %vm548_vm14, %v923_v21, %v545_v17  ;;  %v557_v32 = vmul.f32 %v925_v29, %v540_v27  ;;  %vm562_vm0 = vweird.f32 %v925_v29 }
 0x2a5   : > { %v554_v28 = vsel %vm551_vm15, %v553_v12, %v549_v13  ;;  %vm563_vm2 = vmor %vm561_vm1, %vm562_vm0 }
 0x2a6   : > { %v1229_v18 = vmul.f32 %v554_v28, %v531_v50  ;;  %v1231_v2 = vmul.f32 %v554_v28, %v532_v54  ;;  %v558_v35 = vsub.f32 1.0, %v557_v32 }
 0x2a8   : > { %v575_v33 = vrot.slane %v1229_v18, 4  ;;  %v581_v34 = vrot.slane %v1231_v2, 4  ;;  %v559_v40 = vmul.f32 %v925_v29, %v558_v35 }
 0x2aa   : > { %v576_v36 = vadd.f32 %v575_v33, %v1229_v18  ;;  %v582_v37 = vadd.f32 %v581_v34, %v1231_v2  ;;  %v560_v43 = vadd.f32 %v925_v29, %v559_v40 }
 0x2ac   : > { %v577_v41 = vrot.slane %v576_v36, 2  ;;  %v583_v42 = vrot.slane %v582_v37, 2  ;;  %v564_v31 = vsel %vm563_vm2, %v925_v29, %v560_v43 }
 0x2ad   : > { %v569_v50 = vsel %vm566_vm3, %v568_v48, %v564_v31 }
 0x2ae   : > { %v578_v44 = vadd.f32 %v577_v41, %v576_v36  ;;  %v584_v47 = vadd.f32 %v583_v42, %v582_v37  ;;  %v1237_v57 = vmul.f32 %v569_v50, %v533_v15  ;;  %v1239_v58 = vmul.f32 %v569_v50, %v534_v16 }
 0x2b0   : > { %v579_v49 = vrot.slane %v578_v44, 1  ;;  %v585_v30 = vrot.slane %v584_v47, 1  ;;  %v587_v59 = vrot.slane %v1237_v57, 4  ;;  %v593_v60 = vrot.slane %v1239_v58, 4 }
 0x2b2   : > { %v580_v51 = vadd.f32 %v579_v49, %v578_v44  ;;  %v586_v54 = vadd.f32 %v585_v30, %v584_v47  ;;  %v588_v61 = vadd.f32 %v587_v59, %v1237_v57  ;;  %v594_v62 = vadd.f32 %v593_v60, %v1239_v58 }
 0x2b4   : > { %926 = vrcp.f32 %v580_v51  ;;  %v589_v0 = vrot.slane %v588_v61, 2  ;;  %v595_v1 = vrot.slane %v594_v62, 2  ;;  %v608_v7 = vand.u32 2147483647, %v580_v51 }
 0x2b5   : > { %928 = vrcp.f32 %v586_v54  ;;  %v610_v8 = vand.u32 2147483648, %v580_v51  ;;  %v623_v16 = vand.u32 2147483647, %v586_v54  ;;  %v625_v19 = vand.u32 2147483648, %v586_v54 }
 0x2b6   : > { %v590_v6 = vadd.f32 %v589_v0, %v588_v61  ;;  %v596_v52 = vadd.f32 %v595_v1, %v594_v62  ;;  %vm604_vm6 = vweird.f32 %v580_v51  ;;  %vm619_vm8 = vweird.f32 %v586_v54 }
 0x2b7   : > { %v611_v24 = vor.u32 1.1754944e-38, %v610_v8  ;;  %vm609_vm9 = vcmp.eq.f32.partialorder %v608_v7, 8.507059e+37  ;;  %v626_v27 = vor.u32 1.1754944e-38, %v625_v19  ;;  %vm624_vm11 = vcmp.eq.f32.partialorder %v623_v16, 8.507059e+37 }
 0x2b8   : > { %v591_v10 = vrot.slane %v590_v6, 1  ;;  %v597_v14 = vrot.slane %v596_v52, 1 }
 0x2ba   : > { %v927_v63 = vpop.eup %926  ;;  %v592_v21 = vadd.f32 %v591_v10, %v590_v6  ;;  %v598_v22 = vadd.f32 %v597_v14, %v596_v52 }
 0x2bb   : > { %v929_v3 = vpop.eup %928  ;;  %v600_v4 = vmul.f32 %v927_v63, %v580_v51  ;;  %vm605_vm4 = vweird.f32 %v927_v63 }
 0x2bc   : > { %v615_v5 = vmul.f32 %v929_v3, %v586_v54  ;;  %vm620_vm5 = vweird.f32 %v929_v3  ;;  %vm606_vm7 = vmor %vm604_vm6, %vm605_vm4  ;;  %930 = vrcp.f32 %v592_v21  ;;  %v640_v38 = vand.u32 2147483648, %v592_v21 }
 0x2bd   : > { %v601_v53 = vsub.f32 1.0, %v600_v4  ;;  %vm621_vm10 = vmor %vm619_vm8, %vm620_vm5  ;;  %932 = vrcp.f32 %v598_v22  ;;  %v638_v41 = vand.u32 2147483647, %v592_v21  ;;  %v655_v42 = vand.u32 2147483648, %v598_v22 }
 0x2be   : > { %v616_v9 = vsub.f32 1.0, %v615_v5  ;;  %v653_v43 = vand.u32 2147483647, %v598_v22  ;;  %vm634_vm14 = vweird.f32 %v592_v21  ;;  %v641_v44 = vor.u32 1.1754944e-38, %v640_v38 }
 0x2bf   : > { %v602_v15 = vmul.f32 %v927_v63, %v601_v53  ;;  %vm649_vm0 = vweird.f32 %v598_v22  ;;  %vm639_vm1 = vcmp.eq.f32.partialorder %v638_v41, 8.507059e+37  ;;  %v656_v49 = vor.u32 1.1754944e-38, %v655_v42 }
 0x2c0   : > { %v617_v20 = vmul.f32 %v929_v3, %v616_v9  ;;  %vm654_vm3 = vcmp.eq.f32.partialorder %v653_v43, 8.507059e+37 }
 0x2c1   : > { %v603_v23 = vadd.f32 %v927_v63, %v602_v15 }
 0x2c2   : > { %v618_v25 = vadd.f32 %v929_v3, %v617_v20  ;;  %v931_v32 = vpop.eup %930 }
 0x2c3   : > { %v607_v26 = vsel %vm606_vm7, %v927_v63, %v603_v23  ;;  %v933_v34 = vpop.eup %932  ;;  %v630_v35 = vmul.f32 %v931_v32, %v592_v21  ;;  %vm635_vm12 = vweird.f32 %v931_v32 }
 0x2c4   : > { %v612_v17 = vsel %vm609_vm9, %v611_v24, %v607_v26  ;;  %v622_v12 = vsel %vm621_vm10, %v929_v3, %v618_v25  ;;  %v645_v36 = vmul.f32 %v933_v34, %v598_v22  ;;  %vm650_vm13 = vweird.f32 %v933_v34  ;;  %vm636_vm15 = vmor %vm634_vm14, %vm635_vm12  ;;  %v279_v3 = vpop.xlane.xlu2 %278 }
 0x2c5   : > { %v627_v13 = vsel %vm624_vm11, %v626_v27, %v622_v12  ;;  %v1246_v28 = vmul.f32 %v612_v17, %v1229_v18  ;;  %v631_v37 = vsub.f32 1.0, %v630_v35  ;;  %vm651_vm2 = vmor %vm649_vm0, %vm650_vm13 }
 0x2c6   : > { %v1249_v29 = vmul.f32 %v627_v13, %v1231_v2  ;;  %v646_v39 = vsub.f32 1.0, %v645_v36 }
 0x2c7   : > { %v632_v40 = vmul.f32 %v931_v32, %v631_v37 }
 0x2c8   : > { %v663_v33 = vadd.f32 %v1249_v29, %v1246_v28  ;;  %v647_v18 = vmul.f32 %v933_v34, %v646_v39 }
 0x2c9   : > { %v633_v2 = vadd.f32 %v931_v32, %v632_v40 }
 0x2ca   : > { %664 = vadd.xlane.f32.xlu0 %v663_v33  ;;  %v648_v47 = vadd.f32 %v933_v34, %v647_v18 }
 0x2cb   : > { %v637_v48 = vsel %vm636_vm15, %v931_v32, %v633_v2 }
 0x2cc   : > { %v642_v30 = vsel %vm639_vm1, %v641_v44, %v637_v48  ;;  %v652_v31 = vsel %vm651_vm2, %v933_v34, %v648_v47 }
 0x2cd   : > { %v657_v50 = vsel %vm654_vm3, %v656_v49, %v652_v31  ;;  %v661_v51 = vmul.f32 %v642_v30, %v1237_v57 }
 0x2ce   : > { %v662_v54 = vmul.f32 %v657_v50, %v1239_v58 }
 0x2d0   : > { %v666_v59 = vadd.f32 %v662_v54, %v661_v51 }
 0x2d2   : > { %281 = vadd.xlane.f32.xlu0 %v1186_v11  ;;  %667 = vadd.xlane.f32.xlu1 %v666_v59 }
 0x33d   : > { %v665_v60 = vpop.xlane.xlu0 %664 }
 0x33e   : > { %934 = vrcp.f32 %v665_v60  ;;  %v680_v57 = vand.u32 2147483648, %v665_v60  ;;  %vm674_vm5 = vweird.f32 %v665_v60  ;;  %v678_v58 = vand.u32 2147483647, %v665_v60 }
 0x340   : > { %v681_v9 = vor.u32 1.1754944e-38, %v680_v57  ;;  %vm679_vm7 = vcmp.eq.f32.partialorder %v678_v58, 8.507059e+37 }
 0x344   : > { %v935_v61 = vpop.eup %934 }
 0x345   : > { %v670_v62 = vmul.f32 %v935_v61, %v665_v60  ;;  %v282_v0 = vpop.xlane.xlu0 %281  ;;  %v668_v1 = vpop.xlane.xlu1 %667  ;;  %vm675_vm4 = vweird.f32 %v935_v61 }
 0x346   : > { %936 = vrcp.f32 %v668_v1  ;;  %vm676_vm6 = vmor %vm674_vm5, %vm675_vm4  ;;  %v693_v10 = vand.u32 2147483647, %v668_v1  ;;  %v695_v14 = vand.u32 2147483648, %v668_v1  ;;  %vm689_vm9 = vweird.f32 %v668_v1 }
 0x347   : > { %v671_v63 = vsub.f32 1.0, %v670_v62  ;;  %938 = vlog2.f32 %v282_v0 }
 0x348   : > { %940 = vlog2.f32 %v279_v3  ;;  %vm694_vm11 = vcmp.eq.f32.partialorder %v693_v10, 8.507059e+37  ;;  %v696_v22 = vor.u32 1.1754944e-38, %v695_v14 }
 0x349   : > { %v672_v4 = vmul.f32 %v935_v61, %v671_v63 }
 0x34b   : > { %v673_v11 = vadd.f32 %v935_v61, %v672_v4 }
 0x34c   : > { %v937_v5 = vpop.eup %936 }
 0x34d   : > { %v939_v6 = vpop.eup %938  ;;  %v685_v52 = vmul.f32 %v937_v5, %v668_v1  ;;  %v677_v7 = vsel %vm676_vm6, %v935_v61, %v673_v11  ;;  %vm690_vm8 = vweird.f32 %v937_v5 }
 0x34e   : > { %v941_v8 = vpop.eup %940  ;;  %v286_v15 = vmul.f32 0.6931472, %v939_v6  ;;  %v682_v19 = vsel %vm679_vm7, %v681_v9, %v677_v7  ;;  %vm691_vm10 = vmor %vm689_vm9, %vm690_vm8 }
 0x34f   : > { %v686_v53 = vsub.f32 1.0, %v685_v52  ;;  %v284_v20 = vmul.f32 0.6931472, %v941_v8  ;;  %v699_v26 = vmul.f32 %v682_v19, %v1246_v28  ;;  %v700_v27 = vmul.f32 %v682_v19, %v1249_v29 }
 0x350   : > { %v289_v23 = vsub.f32 %v1178_v55, %v286_v15  ;;  %v290_v24 = vsub.f32 %v1180_v56, %v286_v15 }
 0x351   : > { %v687_v16 = vmul.f32 %v937_v5, %v686_v53  ;;  %v287_v12 = vsub.f32 %v1172_v45, %v284_v20  ;;  %v288_v13 = vsub.f32 %v1174_v46, %v284_v20 }
 0x352   : > { %v705_v36 = vmul.f32 %v699_v26, %v289_v23  ;;  %v706_v37 = vmul.f32 %v700_v27, %v290_v24 }
 0x353   : > { %v688_v21 = vadd.f32 %v937_v5, %v687_v16 }
 0x355   : > { %v692_v25 = vsel %vm691_vm10, %v937_v5, %v688_v21 }
 0x356   : > { %v697_v17 = vsel %vm694_vm11, %v696_v22, %v692_v25 }
 0x357   : > { %v701_v32 = vmul.f32 %v697_v17, %v661_v51  ;;  %v702_v33 = vmul.f32 %v697_v17, %v662_v54 }
 0x359   : > { %v703_v34 = vmul.f32 %v701_v32, %v287_v12  ;;  %v704_v35 = vmul.f32 %v702_v33, %v288_v13 }
 0x35b   : > { %v707_v38 = vadd.f32 %v705_v36, %v703_v34  ;;  %v708_v55 = vadd.f32 %v706_v37, %v704_v35 }
 0x35d   : > { %v709_v39 = vadd.f32 %v708_v55, %v707_v38 }
 0x35f   : > { %710 = vadd.xlane.f32.xlu1 %v709_v39 }
 0x3d2   : > { %v711_v56 = vpop.xlane.xlu1 %710 }
 0x3d3   : > { %v712_v40 = vrot.slane %v711_v56, 4 }
 0x3d5   : > { %v713_v28 = vadd.f32 %v712_v40, %v711_v56 }
 0x3d7   : > { %v714_v41 = vrot.slane %v713_v28, 2 }
 0x3d9   : > { %v715_v29 = vadd.f32 %v714_v41, %v713_v28 }
 0x3db   : > { %v716_v42 = vrot.slane %v715_v29, 1 }
 0x3dd   : > { %v717_v18 = vadd.f32 %v716_v42, %v715_v29 }
 0x3df   : > { %826 = vpush %v717_v18 }
 0x410   : > { %s827_s3 = spop %826 }
 0x411   : > { %s719_s4 = smul.f32 -0.125, %s827_s3 }
 0x413   : > { %721 = sst [smem:[#allocation8]] %s719_s4 }
 0x414 PF: > { %p849_p4 = scmp.eq.s32.totalorder %s1099_s13, 1  ;;  %s728_s7 = sshll.u32 %s1281_s2, 4  ;;  %s729_s7 = int_to_ptr.hbm [resolvable:$true] %s728_s7 }
 0x415   : > { %s1064_s8 = smov [#allocation8]  }
 0x416   : > { %835 = dma.smem_to_hbm (%p849_p4), %s1064_s8, 16, %s729_s7, [#allocation5]  }
 0x417   : > { %1041 = dma.done.wait (%p849_p4), [#allocation5], 16  }
 0x418   : > { %1043 = vsyncadd (%p849_p4), [#allocation5], 4294967280 }
 0x419   : > { %737 = sfence }
 0x41a PF: > { %p14_p5 = scmp.ge.s32.totalorder %s1123_s21, 4   ;;  %s1285_s9 = smov %s1050_s10 }
 0x41b   : > { %s1286_s10 = smov %s1054_s11  ;;  %s1287_s11 = smov %s1136_s26 }
 0x41c   : > { %s1288_s12 = smov %s1123_s21  ;;  %16 = sbr.rel (!%p14_p5) target bundleno = 5 (0x5), region = 76 }
 0x421   :  { %743 = vsyncpa [#allocation4], 1 }
 0x422   :  { %745 = vsyncpa [#allocation4 + $0x1], 1 }
 0x423   :  { %746 = vsyncpa [#allocation7], 1 }
 0x424   :  { %748 = vsyncpa [#allocation7 + $0x1], 1 }
 0x425   :  { %749 = vsyncpa [#allocation5], 1 }
 0x426   :  { %751 = vsyncpa [#allocation5 + $0x1], 1 }

</bundles_post_ra>
